<compile_context>
chip_gen: v5e
topology: v5e:2x2
jax: 0.10.0
libtpu: 0.0.40
codegen_flags: <defaults>
</compile_context>

<pallas_src>
import jax
import jax.numpy as jnp
import numpy as np
from jax.experimental import pallas as pl
from jax.experimental.pallas import tpu as pltpu

_LANE = 128
_ROW_ALIGN = 32                      # int8 native tile is (32, 128)
# ~30 MiB double-buffered pipeline: (1 B in + 4 B out) * 2 buffers = 10 B/elem.
_MAX_BLOCK_ELEMS = 3 * 1024 * 1024
# Above this size, force >= 2 grid steps so v7x's two TensorCores both run.
_MIN_SPLIT_ELEMS = 512 * 1024


def _convert_kernel(x_ref, o_ref):
    # x_ref holds the raw uint8 bytes reinterpreted as int8 (see wrapper).
    # Widen to i32, undo the sign extension with one cheap VPU mask, then a
    # single VALU multiply by the precomputed reciprocal (no f32 divide).
    v = x_ref[...].astype(jnp.int32) & 0xFF
    o_ref[...] = v.astype(jnp.float32) * jnp.float32(1.0 / 255.0)


def _largest_lane_divisor(n: int, max_width: int) -> int:
    """Largest divisor of n that is a multiple of 128 and <= max_width (0 if none)."""
    for k in range(min(n, max_width) // _LANE, 0, -1):
        width = k * _LANE
        if n % width == 0:
            return width
    return 0


def _choose_block(rows: int, cols: int, max_block_elems: int):
    """Pick (block_rows, block_cols) for the (C*T, H*W) view.

    Keeps row blocks 32-aligned (full packed-i8 input tiles) and column blocks
    as lane-dense *divisors* of cols (no masked trailing stores).
    """
    # Whole array fits in a single block.
    if rows * cols <= max_block_elems:
        return rows, cols
    # Prefer full (maximally lane-dense) rows and tile only the row axis.
    budget_rows = max_block_elems // cols
    if budget_rows >= _ROW_ALIGN:
        return (budget_rows // _ROW_ALIGN) * _ROW_ALIGN, cols
    # Even a handful of full rows is too big: tile the lane axis as well,
    # choosing a divisor of cols so every column block is full/unmasked.
    block_rows = rows if rows < _ROW_ALIGN else _ROW_ALIGN
    if cols % _LANE == 0:
        max_cols = max(_LANE, max_block_elems // block_rows)
        bc = _largest_lane_divisor(cols, max_cols)
        if bc:
            return block_rows, bc
    # TODO(synk): huge frame whose H*W has no lane-dense divisor within budget;
    # fall back to full rows (masked lane stores / larger VMEM footprint).
    return block_rows, cols


def _ensure_multi_block(rows, cols, block_rows, block_cols, min_split_elems):
    """Guarantee >= 2 grid steps on large tensors (engages both v7x TCs)."""
    total = rows * cols
    n_blocks = pl.cdiv(rows, block_rows) * pl.cdiv(cols, block_cols)
    if total < min_split_elems or n_blocks >= 2:
        return block_rows, block_cols
    # Single-block grid on a large tensor: split, preferring the row axis.
    if rows >= 2 * _ROW_ALIGN:
        return ((rows // 2) // _ROW_ALIGN) * _ROW_ALIGN, block_cols
    if cols % _LANE == 0:
        half = _largest_lane_divisor(cols, cols // 2)
        if half:
            return block_rows, half
    return block_rows, block_cols


def convert_uint8_to_float(
    x: jax.Array,
    *,
    max_block_elems: int = _MAX_BLOCK_ELEMS,
    min_split_elems: int = _MIN_SPLIT_ELEMS,
) -> jax.Array:
    """JAX/Pallas equivalent of ConvertUint8ToFloat: uint8 (C,T,H,W) -> f32/255."""
    if x.dtype != jnp.uint8:
        raise ValueError(f"image must have dtype uint8, got {x.dtype}")
    c, t, h, w = x.shape
    rows, cols = c * t, h * w
    total = rows * cols

    # If H*W itself is not lane-friendly but the flat length is, re-view the
    # tensor as a lane-dense 2-D slab (avoids masked stores on the f32 output,
    # which is 80% of the HBM traffic).
    if cols % _LANE != 0 and total % _LANE == 0:
        cap = max(_LANE, max_block_elems // _ROW_ALIGN)
        cols = _largest_lane_divisor(total, cap)
        rows = total // cols

    block_rows, block_cols = _choose_block(rows, cols, max_block_elems)
    block_rows, block_cols = _ensure_multi_block(
        rows, cols, block_rows, block_cols, min_split_elems)
    grid = (pl.cdiv(rows, block_rows), pl.cdiv(cols, block_cols))

    # Zero-copy reinterpretation of the bytes as int8 (same bit-width bitcast);
    # keeps HBM-side input traffic at 1 byte/elem while the kernel only uses
    # signed-integer vector ops (verified lowering path).
    x2 = jax.lax.bitcast_convert_type(x.reshape(rows, cols), jnp.int8)

    # Size the scoped-VMEM request from the actual double-buffered pipeline
    # (u8 in + f32 out) with headroom, capped below v7x's 64 MiB physical VMEM.
    block_bytes = block_rows * block_cols * (1 + 4)
    vmem_limit = int(min(48 * 1024 * 1024, max(16 * 1024 * 1024, 2.5 * block_bytes)))

    out = pl.pallas_call(
        _convert_kernel,
        out_shape=jax.ShapeDtypeStruct((rows, cols), jnp.float32),
        grid_spec=pltpu.PrefetchScalarGridSpec(
            num_scalar_prefetch=0,
            grid=grid,
            in_specs=[pl.BlockSpec((block_rows, block_cols), lambda i, j: (i, j))],
            out_specs=pl.BlockSpec((block_rows, block_cols), lambda i, j: (i, j)),
        ),
        compiler_params=pltpu.CompilerParams(
            dimension_semantics=("parallel", "parallel"),
            vmem_limit_bytes=vmem_limit,
        ),
    )(x2)

    return out.reshape(c, t, h, w)


class ConvertUint8ToFloat:
    """JAX wrapper mirroring the PyTorch nn.Module API (no learnable params)."""

    def __call__(self, x: jax.Array) -> jax.Array:
        assert x.dtype == jnp.uint8, "image must have dtype uint8"
        return convert_uint8_to_float(x)


if __name__ == "__main__":
    key = jax.random.PRNGKey(0)

    # Small video tensor (C, T, H, W), uint8.
    C, T, H, W = 3, 4, 16, 32
    x = jax.random.randint(key, (C, T, H, W), 0, 256, dtype=jnp.int32).astype(jnp.uint8)

    module = ConvertUint8ToFloat()
    forward = jax.jit(module.__call__)          # fuses the reshape/bitcast glue
    y = jax.block_until_ready(forward(x))

    ref = x.astype(jnp.float32) / 255.0
    assert y.shape == (C, T, H, W), y.shape
    assert y.dtype == jnp.float32, y.dtype
    np.testing.assert_allclose(np.asarray(y), np.asarray(ref), rtol=1e-6, atol=1e-7)

    # Lane-tiled multi-step path (block_cols is a divisor of H*W -> no masked
    # trailing column block), via an artificially small block budget.
    y_lane = jax.block_until_ready(convert_uint8_to_float(x, max_block_elems=256))
    np.testing.assert_allclose(np.asarray(y_lane), np.asarray(ref), rtol=1e-6, atol=1e-7)

    # Row-tiled path (32-aligned row blocks, partial trailing row block) and
    # the forced >=2-block split used to engage both v7x TensorCores.
    key2 = jax.random.PRNGKey(0)
    x2 = jax.random.randint(key2, (3, 24, 16, 32), 0, 256, dtype=jnp.int32).astype(jnp.uint8)
    ref2 = x2.astype(jnp.float32) / 255.0
    y_rows = jax.block_until_ready(convert_uint8_to_float(x2, max_block_elems=16384))
    np.testing.assert_allclose(np.asarray(y_rows), np.asarray(ref2), rtol=1e-6, atol=1e-7)
    y_split = jax.block_until_ready(convert_uint8_to_float(x2, min_split_elems=1024))
    np.testing.assert_allclose(np.asarray(y_split), np.asarray(ref2), rtol=1e-6, atol=1e-7)

    print("KERNEL_OK")
</pallas_src>

<mosaic_0001>
module attributes {stable_mosaic.version = 11 : i64} {
  func.func @_convert_kernel(%arg0: i32, %arg1: i32, %arg2: memref<12x512xi8, #tpu.memory_space<vmem>>, %arg3: memref<12x512xf32, #tpu.memory_space<vmem>>) attributes {dimension_semantics = [#tpu.dimension_semantics<parallel>, #tpu.dimension_semantics<parallel>], iteration_bounds = array<i64: 1, 1>, scalar_prefetch = 0 : i64, scratch_operands = 0 : i64, tpu.core_type = #tpu.core_type<tc>, window_params = [{transform_indices = @transform_0, window_bounds = array<i64: 12, 512>}, {transform_indices = @transform_1, window_bounds = array<i64: 12, 512>}]} {
    %c0 = arith.constant 0 : index
    %c0_0 = arith.constant 0 : index
    %0 = vector.load %arg2[%c0, %c0_0] : memref<12x512xi8, #tpu.memory_space<vmem>>, vector<12x512xi8>
    %1 = arith.extsi %0 : vector<12x512xi8> to vector<12x512xi32>
    %c255_i32 = arith.constant 255 : i32
    %2 = vector.broadcast %c255_i32 : i32 to vector<12x512xi32>
    %3 = arith.andi %1, %2 : vector<12x512xi32>
    %4 = arith.sitofp %3 : vector<12x512xi32> to vector<12x512xf32>
    %cst = arith.constant 0.00392156886 : f32
    %5 = vector.broadcast %cst : f32 to vector<12x512xf32>
    %6 = arith.mulf %4, %5 : vector<12x512xf32>
    %c0_1 = arith.constant 0 : index
    %c0_2 = arith.constant 0 : index
    %7 = vector.load %arg3[%c0_1, %c0_2] : memref<12x512xf32, #tpu.memory_space<vmem>>, vector<12x512xf32>
    tpu.vector_store %arg3[%c0_1, %c0_2], %6 {strides = array<i32>} : memref<12x512xf32, #tpu.memory_space<vmem>>, vector<12x512xf32>,
    return
  }
  func.func @transform_0(%arg0: i32, %arg1: i32) -> (i32, i32) {
    %c0_i32 = arith.constant 0 : i32
    return %arg0, %arg1 : i32, i32
  }
  func.func @transform_1(%arg0: i32, %arg1: i32) -> (i32, i32) {
    %c0_i32 = arith.constant 0 : i32
    return %arg0, %arg1 : i32, i32
  }
}

</mosaic_0001>

<bundles_post_ra>
// kernel: a_call__.1
= control target key start
LH: loop header
LB: loop body
LE: loop exit
PB: predicated region body
PF: predicated region fallthrough
CT: control target
= control target key end

     0   :  { %s94_s0 = inlined_call_operand.vmem [shape: s8[12,512], index: 0, kind: input, shape index: {}]   ;;  %s95_s1 = inlined_call_operand.vmem [shape: f32[12,512], index: 1, kind: output, shape index: {}]  }
   0x1   :  { %v8_v0 = vld [vmem:[%s94_s0] sm:$0xff]  ;;  %v9_v1 = vld [vmem:[%s94_s0 + $0x8] sm:$0x55] }
   0x2   :  { %v10_v2 = vunpack.c.0.s8 %v8_v0  ;;  %v11_v3 = vunpack.c.1.s8 %v8_v0  ;;  %v12_v4 = vunpack.c.2.s8 %v8_v0  ;;  %v13_v5 = vunpack.c.3.s8 %v8_v0 }
   0x3   :  { %v14_v6 = vunpack.c.0.s8 %v9_v1  ;;  %v15_v7 = vunpack.c.1.s8 %v9_v1  ;;  %v16_v8 = vunpack.c.2.s8 %v9_v1  ;;  %v17_v9 = vunpack.c.3.s8 %v9_v1 }
   0x4   :  { %v18_v10 = vand.u32 255, %v10_v2  ;;  %v19_v11 = vand.u32 255, %v11_v3  ;;  %v20_v12 = vand.u32 255, %v12_v4  ;;  %v21_v13 = vand.u32 255, %v13_v5 }
   0x5   :  { %v22_v14 = vand.u32 255, %v14_v6  ;;  %v23_v15 = vand.u32 255, %v15_v7  ;;  %v24_v16 = vand.u32 255, %v16_v8  ;;  %v25_v17 = vand.u32 255, %v17_v9 }
   0x6   :  { %v26_v18 = vcvt.s32.f32 %v18_v10  ;;  %v27_v19 = vcvt.s32.f32 %v19_v11  ;;  %v28_v20 = vcvt.s32.f32 %v20_v12  ;;  %v29_v21 = vcvt.s32.f32 %v21_v13 }
   0x7   :  { %v30_v22 = vcvt.s32.f32 %v22_v14  ;;  %v31_v23 = vcvt.s32.f32 %v23_v15  ;;  %v32_v27 = vcvt.s32.f32 %v24_v16  ;;  %v33_v29 = vcvt.s32.f32 %v25_v17 }
   0x8   :  { %v34_v24 = vmul.f32 0.003921569, %v26_v18  ;;  %v35_v25 = vmul.f32 0.003921569, %v27_v19  ;;  %v36_v26 = vmul.f32 0.003921569, %v28_v20 }
   0x9   :  { %v37_v28 = vmul.f32 0.003921569, %v29_v21  ;;  %v38_v30 = vmul.f32 0.003921569, %v30_v22  ;;  %v39_v31 = vmul.f32 0.003921569, %v31_v23 }
   0xa   :  { %42 = vst [vmem:[%s95_s1] sm:$0xff] %v34_v24  ;;  %v40_v32 = vmul.f32 0.003921569, %v32_v27  ;;  %v41_v33 = vmul.f32 0.003921569, %v33_v29 }
   0xb   :  { %43 = vst [vmem:[%s95_s1 + $0x8] sm:$0xff] %v35_v25 }
   0xc   :  { %44 = vst [vmem:[%s95_s1 + $0x10] sm:$0xff] %v36_v26 }
   0xd   :  { %45 = vst [vmem:[%s95_s1 + $0x18] sm:$0xff] %v37_v28 }
   0xe   :  { %46 = vst [vmem:[%s95_s1 + $0x20] sm:$0xf] %v38_v30 }
   0xf   :  { %47 = vst [vmem:[%s95_s1 + $0x28] sm:$0xf] %v39_v31 }
  0x10   :  { %48 = vst [vmem:[%s95_s1 + $0x30] sm:$0xf] %v40_v32 }
  0x11   :  { %49 = vst [vmem:[%s95_s1 + $0x38] sm:$0xf] %v41_v33 }

</bundles_post_ra>
